<compile_context>
chip_gen: v5e
topology: v5e:2x2
jax: 0.10.0
libtpu: 0.0.40
codegen_flags: <defaults>
</compile_context>

<pallas_src>
import jax
import jax.numpy as jnp
from jax.experimental import pallas as pl
from jax.experimental.pallas import tpu as pltpu


def _round_up(x, m):
    return ((x + m - 1) // m) * m


# ---------------------------------------------------------------------------
# Kernel: one fused MLP step on a batch tile. The [tb, hidden] activation never
# touches HBM. bf16 operands on the MXU, f32 accumulation, f32 bias/ReLU on the
# VPU, bf16 store.
# ---------------------------------------------------------------------------
def mlp_kernel(x_ref, w1_ref, b1_ref, w2_ref, b2_ref, o_ref):
    h = jnp.dot(x_ref[...], w1_ref[...], preferred_element_type=jnp.float32)
    h = jnp.maximum(h + b1_ref[...], 0.0)
    out = jnp.dot(h.astype(w2_ref.dtype), w2_ref[...],
                  preferred_element_type=jnp.float32)
    o_ref[...] = (out + b2_ref[...]).astype(o_ref.dtype)


def _vmem_capacity_bytes():
    try:
        return int(pltpu.get_tpu_info().vmem_capacity_bytes)
    except Exception:
        return 64 << 20  # conservative fallback (v7x per-TC VMEM)


def _pick_batch_tile(b8, d_in, h_p, c_p, cbytes, out_bytes, max_tile=1024):
    """Pick the batch tile. Returns (tb, vmem_capacity_bytes)."""
    vmem_cap = _vmem_capacity_bytes()
    # ~0.8x per-core capacity, then /2 headroom for compiler scratch / spills.
    budget = int(0.8 * vmem_cap) // 2
    # Weights + biases, single-buffered (constant index_map + pl.Buffered(1)).
    resident = cbytes * (d_in * h_p + h_p * c_p) + 4 * (h_p + c_p)
    # Per batch row: double-buffered x tile, double-buffered out tile,
    # f32 hidden + f32 out intermediates.
    per_row = 2 * cbytes * d_in + 2 * out_bytes * c_p + 4 * h_p + 4 * c_p
    avail = budget - resident
    if avail < per_row * 8:
        # For this classifier head the weights are tiny and always fit VMEM.
        # For very large hidden sizes, the right fix is a K grid axis marked
        # "arbitrary" with an f32 accumulator (P3), not a tb=8 squeeze.
        avail = per_row * 8
    tb = (avail // per_row) // 8 * 8
    tb = int(min(tb, max_tile, b8))
    # Keep >= 2 grid steps when the batch allows it (v7x second TC + pipeline).
    if b8 >= 2 * 256:
        tb = min(tb, _round_up(pl.cdiv(b8, 2), 8))
    # Don't drop below ~256 rows per step (per-step overhead / HBM roofline),
    # unless the batch itself is smaller.
    tb = max(tb, min(256, b8))
    # Shrink tb so batch padding never exceeds ~one extra tile
    # (e.g. B=1032 with tb=1024 would otherwise pad to 2048).
    n_steps = pl.cdiv(b8, tb)
    tb = _round_up(pl.cdiv(b8, n_steps), 8)
    return int(tb), vmem_cap


# ---------------------------------------------------------------------------
# One-time parameter preparation (pad hidden/classes to 128 lanes, cast).
# Done once, not per forward call.
# ---------------------------------------------------------------------------
def prepare_mlp_params(w1, b1, w2, b2, compute_dtype=jnp.bfloat16):
    d_in, hidden = w1.shape
    classes = w2.shape[1]
    h_p = _round_up(hidden, 128)
    c_p = _round_up(classes, 128)
    w1p = jnp.pad(w1.astype(compute_dtype), ((0, 0), (0, h_p - hidden)))
    b1p = jnp.pad(b1.reshape(1, -1).astype(jnp.float32),
                  ((0, 0), (0, h_p - hidden)))
    w2p = jnp.pad(w2.astype(compute_dtype),
                  ((0, h_p - hidden), (0, c_p - classes)))
    b2p = jnp.pad(b2.reshape(1, -1).astype(jnp.float32),
                  ((0, 0), (0, c_p - classes)))
    return {"w1": w1p, "b1": b1p, "w2": w2p, "b2": b2p,
            "d_in": d_in, "classes": classes}


def _mlp_call(xp, w1p, b1p, w2p, b2p, *, tb, d_in, h_p, c_p, out_dtype,
              vmem_limit, flops, bytes_accessed, single_buffer_consts):
    b_p = xp.shape[0]
    const_kw = ({"pipeline_mode": pl.Buffered(1)}
                if single_buffer_consts else {})
    grid_spec = pltpu.PrefetchScalarGridSpec(
        num_scalar_prefetch=0,
        grid=(b_p // tb,),
        in_specs=[
            # x: tiled over batch; last dim = full array dim (no 128 padding).
            pl.BlockSpec((tb, d_in), lambda i: (i, 0)),
            # Weights / biases: constant index_map -> VMEM-resident.
            pl.BlockSpec((d_in, h_p), lambda i: (0, 0), **const_kw),
            pl.BlockSpec((1, h_p), lambda i: (0, 0), **const_kw),
            pl.BlockSpec((h_p, c_p), lambda i: (0, 0), **const_kw),
            pl.BlockSpec((1, c_p), lambda i: (0, 0), **const_kw),
        ],
        out_specs=pl.BlockSpec((tb, c_p), lambda i: (i, 0)),
    )
    return pl.pallas_call(
        mlp_kernel,
        out_shape=jax.ShapeDtypeStruct((b_p, c_p), out_dtype),
        grid_spec=grid_spec,
        compiler_params=pltpu.CompilerParams(
            dimension_semantics=("parallel",),   # shard batch across TCs on v7x
            vmem_limit_bytes=vmem_limit,
        ),
        cost_estimate=pl.CostEstimate(
            flops=flops, transcendentals=0, bytes_accessed=bytes_accessed),
    )(xp, w1p, b1p, w2p, b2p)


def mlp_forward(x, params, *, compute_dtype=jnp.bfloat16):
    """y = relu(x @ w1 + b1) @ w2 + b2 with pre-padded params from prepare_mlp_params."""
    orig_dtype = x.dtype
    out_dtype = compute_dtype  # bf16 writeback; cast back to caller dtype outside
    B, d_in = x.shape
    w1p, b1p, w2p, b2p = params["w1"], params["b1"], params["w2"], params["b2"]
    assert params["d_in"] == d_in, "input_dim mismatch with prepared params"
    h_p = w1p.shape[1]
    c_p = w2p.shape[1]
    classes = params["classes"]

    cbytes = jnp.dtype(compute_dtype).itemsize
    out_bytes = jnp.dtype(out_dtype).itemsize

    b8 = _round_up(B, 8)
    tb, vmem_cap = _pick_batch_tile(b8, d_in, h_p, c_p, cbytes, out_bytes)
    b_p = _round_up(b8, tb)

    # Pad only the batch dim and cast once (no zero-fill-then-rewrite).
    xp = jnp.pad(x.astype(compute_dtype), ((0, b_p - B), (0, 0)))

    # Scoped-VMEM limit sized from the actual working set, clamped to ~0.8x
    # per-core physical capacity (64 MiB per TC on v7x, 128 MiB on v5e/v6e).
    resident = (w1p.size + w2p.size) * cbytes + (b1p.size + b2p.size) * 4
    tiles = 2 * tb * d_in * cbytes + 2 * tb * c_p * out_bytes
    scratch = tb * h_p * 4 + tb * c_p * 4
    vmem_limit = int(min(max(2 * (resident + tiles + scratch), 16 << 20),
                         int(0.8 * vmem_cap)))

    flops = 2 * b_p * (d_in * h_p + h_p * c_p)
    bytes_accessed = (xp.size * cbytes + (w1p.size + w2p.size) * cbytes
                      + (b1p.size + b2p.size) * 4 + b_p * c_p * out_bytes)

    call_kwargs = dict(tb=tb, d_in=d_in, h_p=h_p, c_p=c_p, out_dtype=out_dtype,
                       vmem_limit=vmem_limit, flops=flops,
                       bytes_accessed=bytes_accessed)
    try:
        out_p = _mlp_call(xp, w1p, b1p, w2p, b2p,
                          single_buffer_consts=True, **call_kwargs)
        out_p = jax.block_until_ready(out_p)
    except Exception:
        # Fallback if this jax build rejects pl.Buffered(1) on the main pipeline.
        out_p = _mlp_call(xp, w1p, b1p, w2p, b2p,
                          single_buffer_consts=False, **call_kwargs)

    # Slice off batch / class padding outside the kernel (kernel stays lane-dense).
    return out_p[:B, :classes].astype(orig_dtype)


# ---------------------------------------------------------------------------
# Init / references
# ---------------------------------------------------------------------------
def init_params(key, input_dim, output_dim, num_classes, dtype=jnp.float32):
    """PyTorch nn.Linear-style init: U(-1/sqrt(fan_in), 1/sqrt(fan_in)); weights stored [in, out]."""
    k1, k2, k3, k4 = jax.random.split(key, 4)
    bound1 = 1.0 / (input_dim ** 0.5)
    bound2 = 1.0 / (output_dim ** 0.5)
    w1 = jax.random.uniform(k1, (input_dim, output_dim), dtype, -bound1, bound1)
    b1 = jax.random.uniform(k2, (output_dim,), dtype, -bound1, bound1)
    w2 = jax.random.uniform(k3, (output_dim, num_classes), dtype, -bound2, bound2)
    b2 = jax.random.uniform(k4, (num_classes,), dtype, -bound2, bound2)
    return w1, b1, w2, b2


def mlp_reference_bf16(x, w1, b1, w2, b2, compute_dtype=jnp.bfloat16):
    h = jnp.dot(x.astype(compute_dtype), w1.astype(compute_dtype),
                preferred_element_type=jnp.float32) + b1.astype(jnp.float32)
    h = jnp.maximum(h, 0.0)
    return jnp.dot(h.astype(compute_dtype), w2.astype(compute_dtype),
                   preferred_element_type=jnp.float32) + b2.astype(jnp.float32)


def mlp_reference_f32(x, w1, b1, w2, b2):
    h = jnp.maximum(x @ w1 + b1, 0.0)
    return h @ w2 + b2


if __name__ == "__main__":
    # Small shapes consistent with the module (BiLSTM_6Classes head -> 6 classes).
    batch = 8
    input_dim = 32
    output_dim = 64
    num_classes = 6

    key = jax.random.PRNGKey(0)
    kx, kp = jax.random.split(key)
    x = jax.random.normal(kx, (batch, input_dim), dtype=jnp.float32)
    w1, b1, w2, b2 = init_params(kp, input_dim, output_dim, num_classes)

    params = prepare_mlp_params(w1, b1, w2, b2)   # pad / cast weights once
    out = mlp_forward(x, params)
    out = jax.block_until_ready(out)

    assert out.shape == (batch, num_classes), out.shape
    ref_bf16 = mlp_reference_bf16(x, w1, b1, w2, b2)
    ref_f32 = mlp_reference_f32(x, w1, b1, w2, b2)
    assert jnp.allclose(out, ref_bf16, atol=2e-2, rtol=2e-2), "mismatch vs bf16 reference"
    assert jnp.allclose(out, ref_f32, atol=5e-2, rtol=5e-2), "mismatch vs f32 reference"

    print("KERNEL_OK")
</pallas_src>

<mosaic_0001>
module attributes {stable_mosaic.version = 11 : i64} {
  func.func @mlp_kernel(%arg0: i32, %arg1: memref<8x32xbf16, #tpu.memory_space<vmem>>, %arg2: memref<32x128xbf16, #tpu.memory_space<vmem>>, %arg3: memref<1x128xf32, #tpu.memory_space<vmem>>, %arg4: memref<128x128xbf16, #tpu.memory_space<vmem>>, %arg5: memref<1x128xf32, #tpu.memory_space<vmem>>, %arg6: memref<8x128xbf16, #tpu.memory_space<vmem>>) attributes {dimension_semantics = [#tpu.dimension_semantics<parallel>], iteration_bounds = array<i64: 1>, scalar_prefetch = 0 : i64, scratch_operands = 0 : i64, tpu.core_type = #tpu.core_type<tc>, window_params = [{transform_indices = @transform_0, window_bounds = array<i64: 8, 32>}, {pipeline_mode = #tpu.pipeline_mode<synchronous>, transform_indices = @transform_1, window_bounds = array<i64: 32, 128>}, {pipeline_mode = #tpu.pipeline_mode<synchronous>, transform_indices = @transform_2, window_bounds = array<i64: 1, 128>}, {pipeline_mode = #tpu.pipeline_mode<synchronous>, transform_indices = @transform_3, window_bounds = array<i64: 128, 128>}, {pipeline_mode = #tpu.pipeline_mode<synchronous>, transform_indices = @transform_4, window_bounds = array<i64: 1, 128>}, {transform_indices = @transform_5, window_bounds = array<i64: 8, 128>}]} {
    %c0 = arith.constant 0 : index
    %c0_0 = arith.constant 0 : index
    %0 = vector.load %arg1[%c0, %c0_0] : memref<8x32xbf16, #tpu.memory_space<vmem>>, vector<8x32xbf16>
    %c0_1 = arith.constant 0 : index
    %c0_2 = arith.constant 0 : index
    %1 = vector.load %arg2[%c0_1, %c0_2] : memref<32x128xbf16, #tpu.memory_space<vmem>>, vector<32x128xbf16>
    %cst = arith.constant dense<0.000000e+00> : vector<8x128xf32>
    %2 = tpu.matmul %0, %1, %cst {dimension_numbers = #tpu.dot_dimension_numbers<[1], [0], [0], [1], [0, 0, 1, 1], [], []>} : vector<8x32xbf16>, vector<32x128xbf16>, vector<8x128xf32> -> vector<8x128xf32>
    %c0_3 = arith.constant 0 : index
    %c0_4 = arith.constant 0 : index
    %3 = vector.load %arg3[%c0_3, %c0_4] : memref<1x128xf32, #tpu.memory_space<vmem>>, vector<1x128xf32>
    %4 = vector.broadcast %3 : vector<1x128xf32> to vector<8x128xf32>
    %5 = arith.addf %2, %4 : vector<8x128xf32>
    %cst_5 = arith.constant 0.000000e+00 : f32
    %6 = vector.broadcast %cst_5 : f32 to vector<8x128xf32>
    %7 = arith.maximumf %5, %6 : vector<8x128xf32>
    %8 = arith.truncf %7 : vector<8x128xf32> to vector<8x128xbf16>
    %c0_6 = arith.constant 0 : index
    %c0_7 = arith.constant 0 : index
    %9 = vector.load %arg4[%c0_6, %c0_7] : memref<128x128xbf16, #tpu.memory_space<vmem>>, vector<128x128xbf16>
    %cst_8 = arith.constant dense<0.000000e+00> : vector<8x128xf32>
    %10 = tpu.matmul %8, %9, %cst_8 {dimension_numbers = #tpu.dot_dimension_numbers<[1], [0], [0], [1], [0, 0, 1, 1], [], []>} : vector<8x128xbf16>, vector<128x128xbf16>, vector<8x128xf32> -> vector<8x128xf32>
    %c0_9 = arith.constant 0 : index
    %c0_10 = arith.constant 0 : index
    %11 = vector.load %arg5[%c0_9, %c0_10] : memref<1x128xf32, #tpu.memory_space<vmem>>, vector<1x128xf32>
    %12 = vector.broadcast %11 : vector<1x128xf32> to vector<8x128xf32>
    %13 = arith.addf %10, %12 : vector<8x128xf32>
    %14 = arith.truncf %13 : vector<8x128xf32> to vector<8x128xbf16>
    %c0_11 = arith.constant 0 : index
    %c0_12 = arith.constant 0 : index
    %15 = vector.load %arg6[%c0_11, %c0_12] : memref<8x128xbf16, #tpu.memory_space<vmem>>, vector<8x128xbf16>
    tpu.vector_store %arg6[%c0_11, %c0_12], %14 {strides = array<i32>} : memref<8x128xbf16, #tpu.memory_space<vmem>>, vector<8x128xbf16>,
    return
  }
  func.func @transform_0(%arg0: i32) -> (i32, i32) {
    %c0_i32 = arith.constant 0 : i32
    %c0_i32_0 = arith.constant 0 : i32
    return %arg0, %c0_i32 : i32, i32
  }
  func.func @transform_1(%arg0: i32) -> (i32, i32) {
    %c0_i32 = arith.constant 0 : i32
    %c0_i32_0 = arith.constant 0 : i32
    %c0_i32_1 = arith.constant 0 : i32
    return %c0_i32, %c0_i32_0 : i32, i32
  }
  func.func @transform_2(%arg0: i32) -> (i32, i32) {
    %c0_i32 = arith.constant 0 : i32
    %c0_i32_0 = arith.constant 0 : i32
    %c0_i32_1 = arith.constant 0 : i32
    return %c0_i32, %c0_i32_0 : i32, i32
  }
  func.func @transform_3(%arg0: i32) -> (i32, i32) {
    %c0_i32 = arith.constant 0 : i32
    %c0_i32_0 = arith.constant 0 : i32
    %c0_i32_1 = arith.constant 0 : i32
    return %c0_i32, %c0_i32_0 : i32, i32
  }
  func.func @transform_4(%arg0: i32) -> (i32, i32) {
    %c0_i32 = arith.constant 0 : i32
    %c0_i32_0 = arith.constant 0 : i32
    %c0_i32_1 = arith.constant 0 : i32
    return %c0_i32, %c0_i32_0 : i32, i32
  }
  func.func @transform_5(%arg0: i32) -> (i32, i32) {
    %c0_i32 = arith.constant 0 : i32
    %c0_i32_0 = arith.constant 0 : i32
    return %arg0, %c0_i32 : i32, i32
  }
}

module attributes {stable_mosaic.version = 11 : i64} {
  func.func @mlp_kernel(%arg0: i32, %arg1: memref<8x32xbf16, #tpu.memory_space<vmem>>, %arg2: memref<32x128xbf16, #tpu.memory_space<vmem>>, %arg3: memref<1x128xf32, #tpu.memory_space<vmem>>, %arg4: memref<128x128xbf16, #tpu.memory_space<vmem>>, %arg5: memref<1x128xf32, #tpu.memory_space<vmem>>, %arg6: memref<8x128xbf16, #tpu.memory_space<vmem>>) attributes {dimension_semantics = [#tpu.dimension_semantics<parallel>], iteration_bounds = array<i64: 1>, scalar_prefetch = 0 : i64, scratch_operands = 0 : i64, tpu.core_type = #tpu.core_type<tc>, window_params = [{transform_indices = @transform_0, window_bounds = array<i64: 8, 32>}, {pipeline_mode = #tpu.pipeline_mode<synchronous>, transform_indices = @transform_1, window_bounds = array<i64: 32, 128>}, {pipeline_mode = #tpu.pipeline_mode<synchronous>, transform_indices = @transform_2, window_bounds = array<i64: 1, 128>}, {pipeline_mode = #tpu.pipeline_mode<synchronous>, transform_indices = @transform_3, window_bounds = array<i64: 128, 128>}, {pipeline_mode = #tpu.pipeline_mode<synchronous>, transform_indices = @transform_4, window_bounds = array<i64: 1, 128>}, {transform_indices = @transform_5, window_bounds = array<i64: 8, 128>}]} {
    %c0 = arith.constant 0 : index
    %c0_0 = arith.constant 0 : index
    %0 = vector.load %arg1[%c0, %c0_0] : memref<8x32xbf16, #tpu.memory_space<vmem>>, vector<8x32xbf16>
    %c0_1 = arith.constant 0 : index
    %c0_2 = arith.constant 0 : index
    %1 = vector.load %arg2[%c0_1, %c0_2] : memref<32x128xbf16, #tpu.memory_space<vmem>>, vector<32x128xbf16>
    %cst = arith.constant dense<0.000000e+00> : vector<8x128xf32>
    %2 = tpu.matmul %0, %1, %cst {dimension_numbers = #tpu.dot_dimension_numbers<[1], [0], [0], [1], [0, 0, 1, 1], [], []>} : vector<8x32xbf16>, vector<32x128xbf16>, vector<8x128xf32> -> vector<8x128xf32>
    %c0_3 = arith.constant 0 : index
    %c0_4 = arith.constant 0 : index
    %3 = vector.load %arg3[%c0_3, %c0_4] : memref<1x128xf32, #tpu.memory_space<vmem>>, vector<1x128xf32>
    %4 = vector.broadcast %3 : vector<1x128xf32> to vector<8x128xf32>
    %5 = arith.addf %2, %4 : vector<8x128xf32>
    %cst_5 = arith.constant 0.000000e+00 : f32
    %6 = vector.broadcast %cst_5 : f32 to vector<8x128xf32>
    %7 = arith.maximumf %5, %6 : vector<8x128xf32>
    %8 = arith.truncf %7 : vector<8x128xf32> to vector<8x128xbf16>
    %c0_6 = arith.constant 0 : index
    %c0_7 = arith.constant 0 : index
    %9 = vector.load %arg4[%c0_6, %c0_7] : memref<128x128xbf16, #tpu.memory_space<vmem>>, vector<128x128xbf16>
    %cst_8 = arith.constant dense<0.000000e+00> : vector<8x128xf32>
    %10 = tpu.matmul %8, %9, %cst_8 {dimension_numbers = #tpu.dot_dimension_numbers<[1], [0], [0], [1], [0, 0, 1, 1], [], []>} : vector<8x128xbf16>, vector<128x128xbf16>, vector<8x128xf32> -> vector<8x128xf32>
    %c0_9 = arith.constant 0 : index
    %c0_10 = arith.constant 0 : index
    %11 = vector.load %arg5[%c0_9, %c0_10] : memref<1x128xf32, #tpu.memory_space<vmem>>, vector<1x128xf32>
    %12 = vector.broadcast %11 : vector<1x128xf32> to vector<8x128xf32>
    %13 = arith.addf %10, %12 : vector<8x128xf32>
    %14 = arith.truncf %13 : vector<8x128xf32> to vector<8x128xbf16>
    %c0_11 = arith.constant 0 : index
    %c0_12 = arith.constant 0 : index
    %15 = vector.load %arg6[%c0_11, %c0_12] : memref<8x128xbf16, #tpu.memory_space<vmem>>, vector<8x128xbf16>
    tpu.vector_store %arg6[%c0_11, %c0_12], %14 {strides = array<i32>} : memref<8x128xbf16, #tpu.memory_space<vmem>>, vector<8x128xbf16>,
    return
  }
  func.func @transform_0(%arg0: i32) -> (i32, i32) {
    %c0_i32 = arith.constant 0 : i32
    %c0_i32_0 = arith.constant 0 : i32
    return %arg0, %c0_i32 : i32, i32
  }
  func.func @transform_1(%arg0: i32) -> (i32, i32) {
    %c0_i32 = arith.constant 0 : i32
    %c0_i32_0 = arith.constant 0 : i32
    %c0_i32_1 = arith.constant 0 : i32
    return %c0_i32, %c0_i32_0 : i32, i32
  }
  func.func @transform_2(%arg0: i32) -> (i32, i32) {
    %c0_i32 = arith.constant 0 : i32
    %c0_i32_0 = arith.constant 0 : i32
    %c0_i32_1 = arith.constant 0 : i32
    return %c0_i32, %c0_i32_0 : i32, i32
  }
  func.func @transform_3(%arg0: i32) -> (i32, i32) {
    %c0_i32 = arith.constant 0 : i32
    %c0_i32_0 = arith.constant 0 : i32
    %c0_i32_1 = arith.constant 0 : i32
    return %c0_i32, %c0_i32_0 : i32, i32
  }
  func.func @transform_4(%arg0: i32) -> (i32, i32) {
    %c0_i32 = arith.constant 0 : i32
    %c0_i32_0 = arith.constant 0 : i32
    %c0_i32_1 = arith.constant 0 : i32
    return %c0_i32, %c0_i32_0 : i32, i32
  }
  func.func @transform_5(%arg0: i32) -> (i32, i32) {
    %c0_i32 = arith.constant 0 : i32
    %c0_i32_0 = arith.constant 0 : i32
    return %arg0, %c0_i32 : i32, i32
  }
}

</mosaic_0001>

<bundles_post_ra>
// kernel: tpu_custom_call.1
= control target key start
LH: loop header
LB: loop body
LE: loop exit
PB: predicated region body
PF: predicated region fallthrough
CT: control target
= control target key end

     0   :  { %10 = vsyncpa [#allocation3], 0  ;;  %s423_s0 = inlined_call_operand.hbm [shape: bf16[8,32], index: 0, kind: input, shape index: {}]   ;;  %s424_s1 = inlined_call_operand.hbm [shape: bf16[32,128], index: 1, kind: input, shape index: {}]   ;;  %s425_s2 = inlined_call_operand.vmem [shape: f32[1,128], index: 2, kind: input, shape index: {}]   ;;  %s426_s3 = inlined_call_operand.hbm [shape: bf16[128,128], index: 3, kind: input, shape index: {}]   ;;  %s427_s4 = inlined_call_operand.vmem [shape: f32[1,128], index: 4, kind: input, shape index: {}]   ;;  %s428_s5 = inlined_call_operand.hbm [shape: bf16[8,128], index: 5, kind: output, shape index: {}]  }
   0x1   :  { %11 = vsyncpa [#allocation6], 0  ;;  %s28_s20 = sshll.u32 %s424_s1, 4  ;;  %s29_s20 = int_to_ptr.hbm [resolvable:$true] %s28_s20 }
   0x2   :  { %12 = vsyncpa [#allocation4], 0  ;;  %s369_s21 = smov [#allocation5]   ;;  %s18_s25 = sshll.u32 %s423_s0, 4  ;;  %s19_s25 = int_to_ptr.hbm [resolvable:$true] %s18_s25 }
   0x3   :  { %s30_s22 = sshll.u32 %s369_s21, 4  ;;  %s370_s26 = smov 64   ;;  %s31_s22 = int_to_ptr.vmem [resolvable:$true] %s30_s22 }
   0x4   :  { %s371_s27 = smov 4   ;;  %s372_s28 = smov [#allocation2]  }
   0x5   :  { %36 = dma.hbm_to_vmem [thread:$0]  %s29_s20, 256, %s31_s22, [#allocation6], %s370_s26, %s370_s26, %s371_s27  }
   0x6   :  { %s20_s29 = sshll.u32 %s372_s28, 4  ;;  %s43_s7 = sshll.u32 %s426_s3, 4  ;;  %s21_s29 = int_to_ptr.vmem [resolvable:$true] %s20_s29  ;;  %s44_s7 = int_to_ptr.hbm [resolvable:$true] %s43_s7 }
   0x7   :  { %23 = dma.hbm_to_vmem [thread:$0]  %s19_s25, 64, %s21_s29, [#allocation3]  }
   0x8   :  { %s373_s1 = smov [#allocation7]  }
   0x9   :  { %s45_s8 = sshll.u32 %s373_s1, 4  ;;  %s46_s8 = int_to_ptr.vmem [resolvable:$true] %s45_s8 }
   0xa   :  { %51 = dma.hbm_to_vmem [thread:$0]  %s44_s7, 1024, %s46_s8, [#allocation6], %s370_s26, %s370_s26, %s371_s27  }
   0xb   :  { %363 = dma.done.wait [#allocation3], 64  }
   0xc   :  { %364 = vsyncadd [#allocation3], 4294967232 }
   0xd   :  { %365 = dma.done.wait [#allocation6], 1280  }
   0xe   :  { %366 = vsyncadd [#allocation6], 4294966016  ;;  %v250_v0 = vld [vmem:[#allocation5 + $0x8] sm:$0xff]  ;;  %v249_v2 = vld [vmem:[#allocation5] sm:$0xff]  ;;  %vm88_vm0 = vcmask 261120   ;;  %s374_s11 = smov [#allocation8]  }
   0xf   :  { %v258_v1 = vld [vmem:[#allocation7 + $0x38] sm:$0xff]  ;;  %98 = vmatpush.bf16.msra.mxu0 %v250_v0  ;;  %v257_v3 = vld [vmem:[#allocation7 + $0x30] sm:$0xff]  ;;  %v67_v4 = vld [vmem:[#allocation2] sm:$0xf]  ;;  %s195_s12 = sshll.u32 %s374_s11, 4  ;;  %s197_s15 = sshll.u32 %s428_s5, 4  ;;  %s196_s12 = int_to_ptr.vmem [resolvable:$true] %s195_s12  ;;  %s198_s15 = int_to_ptr.hbm [resolvable:$true] %s197_s15 }
  0x10   :  { %175 = vmatpush.bf16.msra.mxu1 %v258_v1  ;;  %v256_v5 = vld [vmem:[#allocation7 + $0x28] sm:$0xff]  ;;  %v255_v6 = vld [vmem:[#allocation7 + $0x20] sm:$0xff]  ;;  %v254_v7 = vld [vmem:[#allocation7 + $0x18] sm:$0xff] }
  0x11   :  { %v253_v8 = vld [vmem:[#allocation7 + $0x10] sm:$0xff]  ;;  %v252_v9 = vld [vmem:[#allocation7 + $0x8] sm:$0xff]  ;;  %v251_v10 = vld [vmem:[#allocation7] sm:$0xff] }
  0x12   :  { %v265_v11 = vld [vmem:[%s425_s2] ss:$0 sm:$0xff] }
  0x13   :  { %99 = vmatpush.bf16.msra.mxu0 %v249_v2  ;;  %v266_v17 = vld [vmem:[%s427_s4] ss:$0 sm:$0xff] }
  0x14   :  { %176 = vmatpush.bf16.msra.mxu1 %v257_v3 }
  0x16   :  { %216 = vmatmul.msk.bf16.vlgmr.msra.gmra.mxu0 %vm88_vm0, %v67_v4 }
  0x18   :  { %177 = vmatpush.bf16.msra.mxu1 %v256_v5 }
  0x1c   :  { %178 = vmatpush.bf16.msra.mxu1 %v255_v6 }
  0x20   :  { %179 = vmatpush.bf16.msra.mxu1 %v254_v7 }
  0x24   :  { %180 = vmatpush.bf16.msra.mxu1 %v253_v8 }
  0x28   :  { %181 = vmatpush.bf16.msra.mxu1 %v252_v9 }
  0x2c   :  { %182 = vmatpush.bf16.msra.mxu1 %v251_v10 }
  0x93   :  { %v101_v12 = vpop.f32.mrf.mxu0 }
  0x94   :  { %v102_v13 = vadd.f32 %v265_v11, %v101_v12 }
  0x96   :  { %v105_v14 = vmax.f32 %v102_v13, 0.0 }
  0x98   :  { %v106_v15 = vpack.c.bf16 %v105_v14, %v105_v14 }
  0x9a   :  { %183 = vmatmul.bf16.vlgmr.msra.gmra.mxu1 %v106_v15 }
  0x9b   :  { %v103_v16 = vpop.f32.mrf.mxu0 }
 0x117   :  { %v184_v18 = vpop.f32.mrf.mxu1 }
 0x118   :  { %v185_v19 = vadd.f32 %v266_v17, %v184_v18 }
 0x11a   :  { %v188_v20 = vpack.c.bf16 %v185_v19, %v185_v19 }
 0x11c   :  { %189 = vst [vmem:[#allocation8] sm:$0xf] %v188_v20 }
 0x11d   :  { %200 = dma.vmem_to_hbm [thread:$0]  %s196_s12, 64, %s198_s15, [#allocation4]  }
 0x11f   :  { %v186_v21 = vpop.f32.mrf.mxu1 }
 0x120   :  { %367 = dma.done.wait [#allocation4], 64  }
 0x121   :  { %368 = vsyncadd [#allocation4], 4294967232 }
 0x122   :  { %205 = vsyncpa [#allocation3], 1 }
 0x123   :  { %206 = vsyncpa [#allocation6], 1 }
 0x124   :  { %207 = vsyncpa [#allocation4], 1 }

// kernel: tpu_custom_call.1
= control target key start
LH: loop header
LB: loop body
LE: loop exit
PB: predicated region body
PF: predicated region fallthrough
CT: control target
= control target key end

     0   :  { %10 = vsyncpa [#allocation3], 0  ;;  %s423_s0 = inlined_call_operand.hbm [shape: bf16[8,32], index: 0, kind: input, shape index: {}]   ;;  %s424_s1 = inlined_call_operand.hbm [shape: bf16[32,128], index: 1, kind: input, shape index: {}]   ;;  %s425_s2 = inlined_call_operand.vmem [shape: f32[1,128], index: 2, kind: input, shape index: {}]   ;;  %s426_s3 = inlined_call_operand.hbm [shape: bf16[128,128], index: 3, kind: input, shape index: {}]   ;;  %s427_s4 = inlined_call_operand.vmem [shape: f32[1,128], index: 4, kind: input, shape index: {}]   ;;  %s428_s5 = inlined_call_operand.hbm [shape: bf16[8,128], index: 5, kind: output, shape index: {}]  }
   0x1   :  { %11 = vsyncpa [#allocation6], 0  ;;  %s28_s20 = sshll.u32 %s424_s1, 4  ;;  %s29_s20 = int_to_ptr.hbm [resolvable:$true] %s28_s20 }
   0x2   :  { %12 = vsyncpa [#allocation4], 0  ;;  %s369_s21 = smov [#allocation5]   ;;  %s18_s25 = sshll.u32 %s423_s0, 4  ;;  %s19_s25 = int_to_ptr.hbm [resolvable:$true] %s18_s25 }
   0x3   :  { %s30_s22 = sshll.u32 %s369_s21, 4  ;;  %s370_s26 = smov 64   ;;  %s31_s22 = int_to_ptr.vmem [resolvable:$true] %s30_s22 }
   0x4   :  { %s371_s27 = smov 4   ;;  %s372_s28 = smov [#allocation2]  }
   0x5   :  { %36 = dma.hbm_to_vmem [thread:$0]  %s29_s20, 256, %s31_s22, [#allocation6], %s370_s26, %s370_s26, %s371_s27  }
   0x6   :  { %s20_s29 = sshll.u32 %s372_s28, 4  ;;  %s43_s7 = sshll.u32 %s426_s3, 4  ;;  %s21_s29 = int_to_ptr.vmem [resolvable:$true] %s20_s29  ;;  %s44_s7 = int_to_ptr.hbm [resolvable:$true] %s43_s7 }
   0x7   :  { %23 = dma.hbm_to_vmem [thread:$0]  %s19_s25, 64, %s21_s29, [#allocation3]  }
   0x8   :  { %s373_s1 = smov [#allocation7]  }
   0x9   :  { %s45_s8 = sshll.u32 %s373_s1, 4  ;;  %s46_s8 = int_to_ptr.vmem [resolvable:$true] %s45_s8 }
   0xa   :  { %51 = dma.hbm_to_vmem [thread:$0]  %s44_s7, 1024, %s46_s8, [#allocation6], %s370_s26, %s370_s26, %s371_s27  }
   0xb   :  { %363 = dma.done.wait [#allocation3], 64  }
   0xc   :  { %364 = vsyncadd [#allocation3], 4294967232 }
   0xd   :  { %365 = dma.done.wait [#allocation6], 1280  }
   0xe   :  { %366 = vsyncadd [#allocation6], 4294966016  ;;  %v250_v0 = vld [vmem:[#allocation5 + $0x8] sm:$0xff]  ;;  %v249_v2 = vld [vmem:[#allocation5] sm:$0xff]  ;;  %vm88_vm0 = vcmask 261120   ;;  %s374_s11 = smov [#allocation8]  }
   0xf   :  { %v258_v1 = vld [vmem:[#allocation7 + $0x38] sm:$0xff]  ;;  %98 = vmatpush.bf16.msra.mxu0 %v250_v0  ;;  %v257_v3 = vld [vmem:[#allocation7 + $0x30] sm:$0xff]  ;;  %v67_v4 = vld [vmem:[#allocation2] sm:$0xf]  ;;  %s195_s12 = sshll.u32 %s374_s11, 4  ;;  %s197_s15 = sshll.u32 %s428_s5, 4  ;;  %s196_s12 = int_to_ptr.vmem [resolvable:$true] %s195_s12  ;;  %s198_s15 = int_to_ptr.hbm [resolvable:$true] %s197_s15 }
  0x10   :  { %175 = vmatpush.bf16.msra.mxu1 %v258_v1  ;;  %v256_v5 = vld [vmem:[#allocation7 + $0x28] sm:$0xff]  ;;  %v255_v6 = vld [vmem:[#allocation7 + $0x20] sm:$0xff]  ;;  %v254_v7 = vld [vmem:[#allocation7 + $0x18] sm:$0xff] }
  0x11   :  { %v253_v8 = vld [vmem:[#allocation7 + $0x10] sm:$0xff]  ;;  %v252_v9 = vld [vmem:[#allocation7 + $0x8] sm:$0xff]  ;;  %v251_v10 = vld [vmem:[#allocation7] sm:$0xff] }
  0x12   :  { %v265_v11 = vld [vmem:[%s425_s2] ss:$0 sm:$0xff] }
  0x13   :  { %99 = vmatpush.bf16.msra.mxu0 %v249_v2  ;;  %v266_v17 = vld [vmem:[%s427_s4] ss:$0 sm:$0xff] }
  0x14   :  { %176 = vmatpush.bf16.msra.mxu1 %v257_v3 }
  0x16   :  { %216 = vmatmul.msk.bf16.vlgmr.msra.gmra.mxu0 %vm88_vm0, %v67_v4 }
  0x18   :  { %177 = vmatpush.bf16.msra.mxu1 %v256_v5 }
  0x1c   :  { %178 = vmatpush.bf16.msra.mxu1 %v255_v6 }
  0x20   :  { %179 = vmatpush.bf16.msra.mxu1 %v254_v7 }
  0x24   :  { %180 = vmatpush.bf16.msra.mxu1 %v253_v8 }
  0x28   :  { %181 = vmatpush.bf16.msra.mxu1 %v252_v9 }
  0x2c   :  { %182 = vmatpush.bf16.msra.mxu1 %v251_v10 }
  0x93   :  { %v101_v12 = vpop.f32.mrf.mxu0 }
  0x94   :  { %v102_v13 = vadd.f32 %v265_v11, %v101_v12 }
  0x96   :  { %v105_v14 = vmax.f32 %v102_v13, 0.0 }
  0x98   :  { %v106_v15 = vpack.c.bf16 %v105_v14, %v105_v14 }
  0x9a   :  { %183 = vmatmul.bf16.vlgmr.msra.gmra.mxu1 %v106_v15 }
  0x9b   :  { %v103_v16 = vpop.f32.mrf.mxu0 }
 0x117   :  { %v184_v18 = vpop.f32.mrf.mxu1 }
 0x118   :  { %v185_v19 = vadd.f32 %v266_v17, %v184_v18 }
 0x11a   :  { %v188_v20 = vpack.c.bf16 %v185_v19, %v185_v19 }
 0x11c   :  { %189 = vst [vmem:[#allocation8] sm:$0xf] %v188_v20 }
 0x11d   :  { %200 = dma.vmem_to_hbm [thread:$0]  %s196_s12, 64, %s198_s15, [#allocation4]  }
 0x11f   :  { %v186_v21 = vpop.f32.mrf.mxu1 }
 0x120   :  { %367 = dma.done.wait [#allocation4], 64  }
 0x121   :  { %368 = vsyncadd [#allocation4], 4294967232 }
 0x122   :  { %205 = vsyncpa [#allocation3], 1 }
 0x123   :  { %206 = vsyncpa [#allocation6], 1 }
 0x124   :  { %207 = vsyncpa [#allocation4], 1 }

</bundles_post_ra>
